<compile_context>
chip_gen: v6e
topology: v6e:2x2x1
jax: 0.10.0
libtpu: 0.0.40
codegen_flags: <defaults>
</compile_context>

<pallas_src>
import jax
import jax.numpy as jnp
from jax.experimental import pallas as pl
from jax.experimental.pallas import tpu as pltpu


def _round_up(x, m):
    return (x + m - 1) // m * m


def _make_kernel(P, C_total, C_in):
    """Kernel closure over the static shape parameters."""
    k = 1 << (P.bit_length() - 1)   # largest power of two <= P

    def kernel(x_ref, nv_ref, out_ref):
        # x_ref : (tile_v, P*C_total)  features, voxels on the sublane axis
        # nv_ref: (tile_v, 1) float32  per-voxel point counts
        # out_ref: (tile_v, C_in)
        y = x_ref[...].astype(jnp.float32)          # f32 accumulation (bf16-safe)

        # Pairwise-halving tree over the first k points: log2(k) lane-slice adds.
        # Each halving adds lanes at offsets that are multiples of C_total, so the
        # channel index (lane mod C_total) is preserved at every level.
        w = k * C_total
        acc = y[:, :w]
        while w > C_total:
            half = w // 2
            acc = acc[:, :half] + acc[:, half:w]
            w = half
        summed = acc[:, :C_in]                      # (tile_v, C_in)

        # Remaining (non-power-of-two) points, added one slice at a time.
        for p in range(k, P):
            summed = summed + y[:, p * C_total: p * C_total + C_in]

        # Exact division, PyTorch semantics (count==0 -> inf/nan; no clamping).
        out_ref[...] = (summed / nv_ref[...]).astype(out_ref.dtype)

    return kernel


def simple_voxel_forward(features, num_voxels, coors=None,
                         num_input_features=4, tile_v=4096):
    """features: [V, P, C_total], num_voxels: [V], coors unused (as in PyTorch).

    Returns [V, num_input_features] per-voxel point means.  Like the PyTorch
    module, it relies on points beyond num_voxels[v] being zero-padded in
    `features`.
    """
    del coors  # unused by the forward pass (matches the PyTorch module)

    V, P, C_total = features.shape
    C_in = int(num_input_features)
    assert 1 <= C_in <= C_total
    PC = P * C_total
    dtype = features.dtype

    # Free, row-major-preserving reshape: no HBM traffic.
    x2d = features.reshape(V, PC)
    # Counts are tiny (V elements): cast/reshape in the wrapper.
    nv = num_voxels.reshape(-1, 1).astype(jnp.float32)

    # Tile over V (sublane axis): multiple of 8, <= tile_v, and at most
    # ~ceil(V/2) so the grid has >= 2 steps whenever possible (v7x megacore).
    tile = max(8, min(int(tile_v), _round_up(V, 8)))
    if V > 8:
        tile = min(tile, max(8, _round_up((V + 1) // 2, 8)))
    grid = (pl.cdiv(V, tile),)

    itemsize = jnp.dtype(dtype).itemsize
    cost = pl.CostEstimate(
        flops=V * P * C_in + V * C_in,
        transcendentals=0,
        bytes_accessed=V * PC * itemsize + V * 4 + V * C_in * itemsize,
    )

    out = pl.pallas_call(
        _make_kernel(P, C_total, C_in),
        out_shape=jax.ShapeDtypeStruct((V, C_in), dtype),
        grid_spec=pltpu.PrefetchScalarGridSpec(
            num_scalar_prefetch=0,
            grid=grid,
            in_specs=[
                pl.BlockSpec((tile, PC), lambda i: (i, 0)),   # full lane extent
                pl.BlockSpec((tile, 1), lambda i: (i, 0)),
            ],
            out_specs=pl.BlockSpec((tile, C_in), lambda i: (i, 0)),
        ),
        compiler_params=pltpu.CompilerParams(
            dimension_semantics=("parallel",),
            vmem_limit_bytes=32 * 1024 * 1024,
        ),
        cost_estimate=cost,
    )(x2d, nv)
    return out


if __name__ == "__main__":
    key = jax.random.PRNGKey(0)
    k1, k2, k3, k4 = jax.random.split(key, 4)

    # Case 1: C_in == C_total, V not a multiple of the tile (ragged last block),
    # two grid steps.  Points beyond num_voxels[v] are assumed zero-padded by the
    # voxelizer (same assumption as the PyTorch module); here both kernel and
    # reference sum all P slots, so the comparison is exact either way.
    V, P, C_total, C_in = 200, 8, 4, 4
    feats = jax.random.normal(k1, (V, P, C_total), dtype=jnp.float32)
    nvox = jax.random.randint(k2, (V,), minval=1, maxval=P + 1, dtype=jnp.int32)
    coors = jnp.zeros((V, 4), dtype=jnp.int32)   # unused by forward

    out = simple_voxel_forward(feats, nvox, coors, num_input_features=C_in)
    out = jax.block_until_ready(out)
    ref = jnp.sum(feats[:, :, :C_in], axis=1) / nvox.astype(jnp.float32)[:, None]
    assert out.shape == (V, C_in)
    assert jnp.allclose(out, ref, atol=1e-5, rtol=1e-5), float(
        jnp.max(jnp.abs(out - ref)))

    # Case 2: C_in < C_total (in-kernel channel select, no wrapper slice copy)
    # and non-power-of-two P (leftover-point adds), still ragged.
    V2, P2, C_total2, C_in2 = 130, 5, 6, 4
    feats2 = jax.random.normal(k3, (V2, P2, C_total2), dtype=jnp.float32)
    nvox2 = jax.random.randint(k4, (V2,), minval=1, maxval=P2 + 1, dtype=jnp.int32)

    out2 = simple_voxel_forward(feats2, nvox2, None, num_input_features=C_in2)
    out2 = jax.block_until_ready(out2)
    ref2 = jnp.sum(feats2[:, :, :C_in2], axis=1) / nvox2.astype(
        jnp.float32)[:, None]
    assert out2.shape == (V2, C_in2)
    assert jnp.allclose(out2, ref2, atol=1e-5, rtol=1e-5), float(
        jnp.max(jnp.abs(out2 - ref2)))

    print("KERNEL_OK")
</pallas_src>

<mosaic_0001>
module attributes {stable_mosaic.version = 11 : i64} {
  func.func @kernel(%arg0: i32, %arg1: memref<104x32xf32, #tpu.memory_space<vmem>>, %arg2: memref<104x1xf32, #tpu.memory_space<vmem>>, %arg3: memref<104x4xf32, #tpu.memory_space<vmem>>) attributes {dimension_semantics = [#tpu.dimension_semantics<parallel>], iteration_bounds = array<i64: 2>, scalar_prefetch = 0 : i64, scratch_operands = 0 : i64, tpu.core_type = #tpu.core_type<tc>, window_params = [{transform_indices = @transform_0, window_bounds = array<i64: 104, 32>}, {transform_indices = @transform_1, window_bounds = array<i64: 104, 1>}, {transform_indices = @transform_2, window_bounds = array<i64: 104, 4>}]} {
    %c0 = arith.constant 0 : index
    %c0_0 = arith.constant 0 : index
    %0 = vector.load %arg1[%c0, %c0_0] : memref<104x32xf32, #tpu.memory_space<vmem>>, vector<104x32xf32>
    %1 = vector.extract_strided_slice %0 {offsets = [0, 0], sizes = [104, 16], strides = [1, 1]} : vector<104x32xf32> to vector<104x16xf32>
    %2 = vector.extract_strided_slice %0 {offsets = [0, 16], sizes = [104, 16], strides = [1, 1]} : vector<104x32xf32> to vector<104x16xf32>
    %3 = arith.addf %1, %2 : vector<104x16xf32>
    %4 = vector.extract_strided_slice %3 {offsets = [0, 0], sizes = [104, 8], strides = [1, 1]} : vector<104x16xf32> to vector<104x8xf32>
    %5 = vector.extract_strided_slice %3 {offsets = [0, 8], sizes = [104, 8], strides = [1, 1]} : vector<104x16xf32> to vector<104x8xf32>
    %6 = arith.addf %4, %5 : vector<104x8xf32>
    %7 = vector.extract_strided_slice %6 {offsets = [0, 0], sizes = [104, 4], strides = [1, 1]} : vector<104x8xf32> to vector<104x4xf32>
    %8 = vector.extract_strided_slice %6 {offsets = [0, 4], sizes = [104, 4], strides = [1, 1]} : vector<104x8xf32> to vector<104x4xf32>
    %9 = arith.addf %7, %8 : vector<104x4xf32>
    %c0_1 = arith.constant 0 : index
    %c0_2 = arith.constant 0 : index
    %10 = vector.load %arg2[%c0_1, %c0_2] : memref<104x1xf32, #tpu.memory_space<vmem>>, vector<104x1xf32>
    %11 = vector.broadcast %10 : vector<104x1xf32> to vector<104x4xf32>
    %12 = arith.divf %9, %11 : vector<104x4xf32>
    %c0_3 = arith.constant 0 : index
    %c0_4 = arith.constant 0 : index
    %13 = vector.load %arg3[%c0_3, %c0_4] : memref<104x4xf32, #tpu.memory_space<vmem>>, vector<104x4xf32>
    tpu.vector_store %arg3[%c0_3, %c0_4], %12 {strides = array<i32>} : memref<104x4xf32, #tpu.memory_space<vmem>>, vector<104x4xf32>,
    return
  }
  func.func @transform_0(%arg0: i32) -> (i32, i32) {
    %c0_i32 = arith.constant 0 : i32
    %c0_i32_0 = arith.constant 0 : i32
    return %arg0, %c0_i32 : i32, i32
  }
  func.func @transform_1(%arg0: i32) -> (i32, i32) {
    %c0_i32 = arith.constant 0 : i32
    %c0_i32_0 = arith.constant 0 : i32
    return %arg0, %c0_i32 : i32, i32
  }
  func.func @transform_2(%arg0: i32) -> (i32, i32) {
    %c0_i32 = arith.constant 0 : i32
    %c0_i32_0 = arith.constant 0 : i32
    return %arg0, %c0_i32 : i32, i32
  }
}

</mosaic_0001>

<bundles_post_ra>
// kernel: tpu_custom_call.1
= control target key start
LH: loop header
LB: loop body
LE: loop exit
PB: predicated region body
PF: predicated region fallthrough
CT: control target
= control target key end

     0   :  { %s1063_s9 = smov 0   ;;  %s1065_s10 = smov 0   ;;  %s1354_s0 = inlined_call_operand.vmem [shape: f32[200,32], index: 0, kind: input, shape index: {}]   ;;  %s1355_s1 = inlined_call_operand.vmem [shape: f32[200,1], index: 1, kind: input, shape index: {}]   ;;  %s1356_s2 = inlined_call_operand.vmem [shape: f32[200,4], index: 2, kind: output, shape index: {}]  }
   0x1   :  { %s1067_s11 = smov 0  }
   0x2 LB: > { %s1076_s12 = sadd.s32 4294967295, %s1010_s11   ;;  %s1078_s13 = sadd.s32 1, %s1010_s11   ;;  %s1010_s11 = sphi %s1067_s11, %s1363_s11   ;;  %s1006_s10 = sphi %s1065_s10, %s1362_s10   ;;  %s1002_s9 = sphi %s1063_s9, %s1361_s9  }
   0x3   : > { %s68_s14 = ssub.s32 %s1010_s11, %s1078_s13  ;;  %s71_s15 = sadd.s32 1, %s1006_s10 }
   0x4   : > { %p69_p0 = scmp.eq.s32.totalorder %s68_s14, 0  ;;  %p81_p1 = scmp.ne.s32.totalorder %s1006_s10, %s1002_s9 }
   0x5   : > { %p82_p2 = scmp.eq.s32.totalorder %s1076_s12, 1  ;;  %p814_p3 = scmp.ge.s32.totalorder %s1010_s11, 1 }
   0x6   : > { %s1086_s16 = scalar_select %p69_p0, %s1006_s10, %s71_s15  }
   0x7   : > { %p1088_p4 = por %p82_p2, %p81_p1  ;;  %p140_p5 = scmp.lt.s32.totalorder %s1010_s11, 3 }
   0x9   : > { %p141_p6 = pnand %p814_p3, %p140_p5 }
   0xa   : > { %s1093_s18 = smul.u32 (!%p141_p6), 13, %s1076_s12  ;;  %s1044_s24 = smov (!%p141_p6), 112  }
   0xb   : > { %144 = sbr.rel (%p141_p6) target bundleno = 452 (0x1c4), region = 28  ;;  %s1046_s25 = smov (!%p141_p6), 120  }
   0xc   : > { %p179_p7 = scmp.lt.s32.totalorder (!%p141_p6), %s1093_s18, 24  ;;  %s1047_s29 = smov (!%p141_p6), 124  }
   0xd   : > { %s171_s30 = sand.u32 (!%p141_p6), 1, %s1002_s9  }
   0xe   : > { %s830_s3 = smul.u32 (!%p141_p6), 104, %s171_s30 }
  0x10   : > { %s1097_s19 = scalar_select %p179_p7, %s1093_s18, 24  ;;  %v1045_v10 = vmov 0   ;;  %vm519_vm0 = vcmask 31744  }
  0x11   : > { %925 = vset.pattern.permute.xlu1 %v1045_v10  ;;  %924 = vset.pattern.permute.xlu0 %v1045_v10  ;;  %s1225_s4 = scalar_lea.vmem [#allocation2], %s830_s3   ;;  %s541_s5 = ssub.s32 (%p1088_p4), 25, %s1093_s18 }
  0x12   : > { %s815_s20 = sshll.u32 %s1097_s19, 3  ;;  %s829_s6 = smul.u32 (%p1088_p4), 104, %s1076_s12 }
  0x13   : > { %s182_s23 = scalar_lea.vmem %s1354_s0, %s815_s20  ;;  %s196_s28 = scalar_lea.vmem %s1355_s1, %s815_s20 }
  0x14   : > { %v207_v0 = vld [vmem:[%s182_s23] sm:$0xff]  ;;  %v209_v1 = vld [vmem:[%s182_s23 + $0x10] sm:$0xff]  ;;  %v208_v2 = vld [vmem:[%s182_s23 + $0x8] sm:$0xff]  ;;  %p542_p8 = scmp.lt.s32.totalorder (%p1088_p4), %s541_s5, 13  ;;  %s1272_s9 = scalar_lea.vmem (%p1088_p4), %s1356_s2, %s829_s6  }
  0x15   : > { %233 = vrot.lane.b32.xlu0 %v207_v0, %s1044_s24  ;;  %237 = vrot.lane.b32.xlu1 %v209_v1, %s1044_s24  ;;  %v210_v3 = vld [vmem:[%s182_s23 + $0x18] sm:$0xff]  ;;  %v211_v4 = vld [vmem:[%s182_s23 + $0x20] sm:$0xff] }
  0x16   : > { %v212_v5 = vld [vmem:[%s182_s23 + $0x28] sm:$0xff]  ;;  %v213_v6 = vld [vmem:[%s182_s23 + $0x30] sm:$0xff]  ;;  %v214_v7 = vld [vmem:[%s182_s23 + $0x38] sm:$0xff] }
  0x17   : > { %v215_v8 = vld [vmem:[%s182_s23 + $0x40] sm:$0xff]  ;;  %v216_v9 = vld [vmem:[%s182_s23 + $0x48] sm:$0xff]  ;;  %v217_v11 = vld [vmem:[%s182_s23 + $0x50] sm:$0xff] }
  0x18   : > { %v218_v12 = vld [vmem:[%s182_s23 + $0x58] sm:$0xff]  ;;  %v219_v13 = vld [vmem:[%s182_s23 + $0x60] sm:$0xff]  ;;  %v416_v40 = vld [vmem:[%s196_s28 + $0x8] sm:$0xff] }
  0x19   : > { %235 = vrot.lane.b32.xlu0 %v208_v2, %s1044_s24  ;;  %239 = vrot.lane.b32.xlu1 %v210_v3, %s1044_s24  ;;  %v415_v41 = vld [vmem:[%s196_s28] sm:$0xff]  ;;  %v417_v42 = vld [vmem:[%s196_s28 + $0x10] sm:$0xff] }
  0x1a   : > { %v418_v43 = vld [vmem:[%s196_s28 + $0x18] sm:$0xff]  ;;  %v419_v44 = vld [vmem:[%s196_s28 + $0x20] sm:$0xff]  ;;  %v420_v45 = vld [vmem:[%s196_s28 + $0x28] sm:$0xff] }
  0x1b   : > { %v421_v46 = vld [vmem:[%s196_s28 + $0x30] sm:$0xff]  ;;  %v422_v47 = vld [vmem:[%s196_s28 + $0x38] sm:$0xff]  ;;  %v423_v48 = vld [vmem:[%s196_s28 + $0x40] sm:$0xff] }
  0x1c   : > { %v424_v49 = vld [vmem:[%s196_s28 + $0x48] sm:$0xff]  ;;  %v425_v50 = vld [vmem:[%s196_s28 + $0x50] sm:$0xff]  ;;  %v426_v51 = vld [vmem:[%s196_s28 + $0x58] sm:$0xff] }
  0x1d   : > { %241 = vrot.lane.b32.xlu0 %v211_v4, %s1044_s24  ;;  %243 = vrot.lane.b32.xlu1 %v212_v5, %s1044_s24  ;;  %v427_v52 = vld [vmem:[%s196_s28 + $0x60] sm:$0xff] }
  0x21   : > { %245 = vrot.lane.b32.xlu0 %v213_v6, %s1044_s24  ;;  %247 = vrot.lane.b32.xlu1 %v214_v7, %s1044_s24 }
  0x25   : > { %249 = vrot.lane.b32.xlu0 %v215_v8, %s1044_s24  ;;  %251 = vrot.lane.b32.xlu1 %v216_v9, %s1044_s24 }
  0x29   : > { %253 = vrot.lane.b32.xlu0 %v217_v11, %s1044_s24  ;;  %255 = vrot.lane.b32.xlu1 %v218_v12, %s1044_s24 }
  0x2d   : > { %257 = vrot.lane.b32.xlu0 %v219_v13, %s1044_s24 }
  0x87   : > { %v234_v14 = vpop.permute.xlu0 %233  ;;  %v238_v15 = vpop.permute.xlu1 %237 }
  0x88   : > { %v1105_v16 = vadd.f32 %v234_v14, %v207_v0  ;;  %v1109_v17 = vadd.f32 %v238_v15, %v209_v1 }
  0x8a   : > { %298 = vrot.lane.b32.xlu1 %v1105_v16, %s1046_s25 }
  0x8b   : > { %v236_v18 = vpop.permute.xlu0 %235  ;;  %v240_v19 = vpop.permute.xlu1 %239 }
  0x8c   : > { %v1111_v20 = vadd.f32 %v236_v18, %v208_v2  ;;  %v1117_v21 = vadd.f32 %v240_v19, %v210_v3 }
  0x8e   : > { %302 = vrot.lane.b32.xlu1 %v1109_v17, %s1046_s25  ;;  %300 = vrot.lane.b32.xlu0 %v1111_v20, %s1046_s25 }
  0x8f   : > { %v242_v22 = vpop.permute.xlu0 %241  ;;  %v244_v23 = vpop.permute.xlu1 %243 }
  0x90   : > { %v1119_v24 = vadd.f32 %v242_v22, %v211_v4  ;;  %v1125_v25 = vadd.f32 %v244_v23, %v212_v5 }
  0x92   : > { %304 = vrot.lane.b32.xlu0 %v1117_v21, %s1046_s25  ;;  %306 = vrot.lane.b32.xlu1 %v1119_v24, %s1046_s25 }
  0x93   : > { %v246_v26 = vpop.permute.xlu0 %245  ;;  %v248_v27 = vpop.permute.xlu1 %247 }
  0x94   : > { %v1127_v28 = vadd.f32 %v246_v26, %v213_v6  ;;  %v1133_v29 = vadd.f32 %v248_v27, %v214_v7 }
  0x96   : > { %308 = vrot.lane.b32.xlu0 %v1125_v25, %s1046_s25  ;;  %310 = vrot.lane.b32.xlu1 %v1127_v28, %s1046_s25 }
  0x97   : > { %v250_v30 = vpop.permute.xlu0 %249  ;;  %v252_v31 = vpop.permute.xlu1 %251 }
  0x98   : > { %v1135_v32 = vadd.f32 %v250_v30, %v215_v8  ;;  %v1141_v33 = vadd.f32 %v252_v31, %v216_v9 }
  0x9a   : > { %312 = vrot.lane.b32.xlu0 %v1133_v29, %s1046_s25  ;;  %314 = vrot.lane.b32.xlu1 %v1135_v32, %s1046_s25 }
  0x9b   : > { %v254_v34 = vpop.permute.xlu0 %253  ;;  %v256_v35 = vpop.permute.xlu1 %255 }
  0x9c   : > { %v1143_v36 = vadd.f32 %v254_v34, %v217_v11  ;;  %v1149_v37 = vadd.f32 %v256_v35, %v218_v12 }
  0x9e   : > { %316 = vrot.lane.b32.xlu0 %v1141_v33, %s1046_s25  ;;  %318 = vrot.lane.b32.xlu1 %v1143_v36, %s1046_s25 }
  0x9f   : > { %v258_v38 = vpop.permute.xlu0 %257 }
  0xa0   : > { %v1151_v39 = vadd.f32 %v258_v38, %v219_v13 }
  0xa2   : > { %320 = vrot.lane.b32.xlu0 %v1149_v37, %s1046_s25  ;;  %322 = vrot.lane.b32.xlu1 %v1151_v39, %s1046_s25 }
  0xa6   : > { %435 = vperm.xlu1 %925, %v416_v40   ;;  %430 = vperm.xlu0 %924, %v415_v41  }
  0xaa   : > { %440 = vperm.xlu1 %925, %v417_v42   ;;  %445 = vperm.xlu0 %924, %v418_v43  }
  0xae   : > { %450 = vperm.xlu1 %925, %v419_v44   ;;  %455 = vperm.xlu0 %924, %v420_v45  }
  0xb2   : > { %460 = vperm.xlu1 %925, %v421_v46   ;;  %465 = vperm.xlu0 %924, %v422_v47  }
  0xb6   : > { %470 = vperm.xlu1 %925, %v423_v48   ;;  %475 = vperm.xlu0 %924, %v424_v49  }
  0xba   : > { %480 = vperm.xlu1 %925, %v425_v50   ;;  %485 = vperm.xlu0 %924, %v426_v51  }
  0xbe   : > { %490 = vperm.xlu1 %925, %v427_v52  }
  0xfc   : > { %v299_v53 = vpop.permute.xlu1 %298 }
  0xfd   : > { %v337_v54 = vadd.f32 %v299_v53, %v1105_v16 }
  0xff   : > { %363 = vrot.lane.b32.xlu0 %v337_v54, %s1047_s29 }
 0x100   : > { %v303_v55 = vpop.permute.xlu1 %302  ;;  %v301_v56 = vpop.permute.xlu0 %300 }
 0x101   : > { %v1165_v57 = vadd.f32 %v303_v55, %v1109_v17  ;;  %v1168_v58 = vadd.f32 %v301_v56, %v1111_v20 }
 0x103   : > { %367 = vrot.lane.b32.xlu0 %v1165_v57, %s1047_s29  ;;  %365 = vrot.lane.b32.xlu1 %v1168_v58, %s1047_s29 }
 0x104   : > { %v307_v59 = vpop.permute.xlu1 %306  ;;  %v305_v60 = vpop.permute.xlu0 %304 }
 0x105   : > { %v1175_v61 = vadd.f32 %v307_v59, %v1119_v24  ;;  %v1178_v62 = vadd.f32 %v305_v60, %v1117_v21 }
 0x107   : > { %371 = vrot.lane.b32.xlu0 %v1175_v61, %s1047_s29  ;;  %369 = vrot.lane.b32.xlu1 %v1178_v62, %s1047_s29 }
 0x108   : > { %v311_v63 = vpop.permute.xlu1 %310  ;;  %v309_v0 = vpop.permute.xlu0 %308 }
 0x109   : > { %v1185_v1 = vadd.f32 %v311_v63, %v1127_v28  ;;  %v1188_v2 = vadd.f32 %v309_v0, %v1125_v25 }
 0x10b   : > { %375 = vrot.lane.b32.xlu0 %v1185_v1, %s1047_s29  ;;  %373 = vrot.lane.b32.xlu1 %v1188_v2, %s1047_s29 }
 0x10c   : > { %v315_v3 = vpop.permute.xlu1 %314  ;;  %v313_v4 = vpop.permute.xlu0 %312 }
 0x10d   : > { %v1195_v5 = vadd.f32 %v315_v3, %v1135_v32  ;;  %v1198_v6 = vadd.f32 %v313_v4, %v1133_v29 }
 0x10f   : > { %379 = vrot.lane.b32.xlu0 %v1195_v5, %s1047_s29  ;;  %377 = vrot.lane.b32.xlu1 %v1198_v6, %s1047_s29 }
 0x110   : > { %v319_v7 = vpop.permute.xlu1 %318  ;;  %v317_v8 = vpop.permute.xlu0 %316 }
 0x111   : > { %v1205_v9 = vadd.f32 %v319_v7, %v1143_v36  ;;  %v1208_v10 = vadd.f32 %v317_v8, %v1141_v33 }
 0x113   : > { %383 = vrot.lane.b32.xlu0 %v1205_v9, %s1047_s29  ;;  %381 = vrot.lane.b32.xlu1 %v1208_v10, %s1047_s29 }
 0x114   : > { %v323_v11 = vpop.permute.xlu1 %322  ;;  %v321_v12 = vpop.permute.xlu0 %320 }
 0x115   : > { %v1215_v13 = vadd.f32 %v323_v11, %v1151_v39  ;;  %v1218_v14 = vadd.f32 %v321_v12, %v1149_v37 }
 0x117   : > { %387 = vrot.lane.b32.xlu0 %v1215_v13, %s1047_s29  ;;  %385 = vrot.lane.b32.xlu1 %v1218_v14, %s1047_s29 }
 0x121   : > { %v436_v15 = vpop.permute.xlu1 %435  ;;  %v431_v16 = vpop.permute.xlu0 %430 }
 0x122   : > { %926 = vrcp.f32 %v431_v16 }
 0x123   : > { %928 = vrcp.f32 %v436_v15 }
 0x125   : > { %v441_v17 = vpop.permute.xlu1 %440  ;;  %v446_v18 = vpop.permute.xlu0 %445 }
 0x126   : > { %930 = vrcp.f32 %v441_v17 }
 0x127   : > { %932 = vrcp.f32 %v446_v18 }
 0x129   : > { %v451_v19 = vpop.permute.xlu1 %450  ;;  %v456_v20 = vpop.permute.xlu0 %455 }
 0x12a   : > { %934 = vrcp.f32 %v451_v19 }
 0x12b   : > { %936 = vrcp.f32 %v456_v20 }
 0x12d   : > { %v461_v21 = vpop.permute.xlu1 %460  ;;  %v466_v22 = vpop.permute.xlu0 %465 }
 0x12e   : > { %938 = vrcp.f32 %v461_v21 }
 0x12f   : > { %v927_v30 = vpop.eup %926  ;;  %940 = vrcp.f32 %v466_v22 }
 0x130   : > { %v929_v34 = vpop.eup %928 }
 0x131   : > { %v471_v23 = vpop.permute.xlu1 %470  ;;  %v476_v24 = vpop.permute.xlu0 %475 }
 0x132   : > { %942 = vrcp.f32 %v471_v23 }
 0x133   : > { %v931_v37 = vpop.eup %930  ;;  %944 = vrcp.f32 %v476_v24 }
 0x134   : > { %v933_v42 = vpop.eup %932 }
 0x135   : > { %v481_v25 = vpop.permute.xlu1 %480  ;;  %v486_v26 = vpop.permute.xlu0 %485 }
 0x136   : > { %946 = vrcp.f32 %v481_v25 }
 0x137   : > { %v935_v45 = vpop.eup %934  ;;  %948 = vrcp.f32 %v486_v26 }
 0x138   : > { %v937_v50 = vpop.eup %936 }
 0x139   : > { %v491_v27 = vpop.permute.xlu1 %490 }
 0x13a   : > { %950 = vrcp.f32 %v491_v27 }
 0x13b   : > { %v939_v53 = vpop.eup %938 }
 0x171   : > { %v364_v28 = vpop.permute.xlu0 %363 }
 0x172   : > { %v402_v29 = vadd.f32 %v364_v28, %v337_v54 }
 0x174   : > { %v494_v31 = vmul.f32 %v927_v30, %v402_v29 }
 0x175   : > { %v366_v32 = vpop.permute.xlu1 %365  ;;  %v368_v33 = vpop.permute.xlu0 %367 }
 0x176   : > { %520 = vst.msk [vmem:[%s1225_s4] sm:$0xff] %vm519_vm0, %v494_v31  ;;  %v403_v35 = vadd.f32 %v366_v32, %v1168_v58  ;;  %v404_v36 = vadd.f32 %v368_v33, %v1165_v57  ;;  %v941_v58 = vpop.eup %940 }
 0x178   : > { %v496_v38 = vmul.f32 %v929_v34, %v403_v35  ;;  %v498_v39 = vmul.f32 %v931_v37, %v404_v36 }
 0x179   : > { %v370_v40 = vpop.permute.xlu1 %369  ;;  %v372_v41 = vpop.permute.xlu0 %371 }
 0x17a   : > { %521 = vst.msk [vmem:[%s1225_s4 + $0x8] sm:$0xff] %vm519_vm0, %v496_v38  ;;  %522 = vst.msk [vmem:[%s1225_s4 + $0x10] sm:$0xff] %vm519_vm0, %v498_v39  ;;  %v405_v43 = vadd.f32 %v370_v40, %v1178_v62  ;;  %v406_v44 = vadd.f32 %v372_v41, %v1175_v61  ;;  %v943_v61 = vpop.eup %942 }
 0x17c   : > { %v500_v46 = vmul.f32 %v933_v42, %v405_v43  ;;  %v502_v47 = vmul.f32 %v935_v45, %v406_v44 }
 0x17d   : > { %v374_v48 = vpop.permute.xlu1 %373  ;;  %v376_v49 = vpop.permute.xlu0 %375 }
 0x17e   : > { %523 = vst.msk [vmem:[%s1225_s4 + $0x18] sm:$0xff] %vm519_vm0, %v500_v46  ;;  %524 = vst.msk [vmem:[%s1225_s4 + $0x20] sm:$0xff] %vm519_vm0, %v502_v47  ;;  %v407_v51 = vadd.f32 %v374_v48, %v1188_v2  ;;  %v408_v52 = vadd.f32 %v376_v49, %v1185_v1  ;;  %v945_v2 = vpop.eup %944 }
 0x180   : > { %v504_v54 = vmul.f32 %v937_v50, %v407_v51  ;;  %v506_v55 = vmul.f32 %v939_v53, %v408_v52 }
 0x181   : > { %v378_v56 = vpop.permute.xlu1 %377  ;;  %v380_v57 = vpop.permute.xlu0 %379 }
 0x182   : > { %525 = vst.msk [vmem:[%s1225_s4 + $0x28] sm:$0xff] %vm519_vm0, %v504_v54  ;;  %526 = vst.msk [vmem:[%s1225_s4 + $0x30] sm:$0xff] %vm519_vm0, %v506_v55  ;;  %v409_v59 = vadd.f32 %v378_v56, %v1198_v6  ;;  %v410_v60 = vadd.f32 %v380_v57, %v1195_v5  ;;  %v947_v6 = vpop.eup %946 }
 0x183   : > { %v949_v12 = vpop.eup %948 }
 0x184   : > { %v508_v62 = vmul.f32 %v941_v58, %v409_v59  ;;  %v510_v63 = vmul.f32 %v943_v61, %v410_v60  ;;  %v951_v17 = vpop.eup %950 }
 0x185   : > { %v382_v0 = vpop.permute.xlu1 %381  ;;  %v384_v1 = vpop.permute.xlu0 %383 }
 0x186   : > { %527 = vst.msk [vmem:[%s1225_s4 + $0x38] sm:$0xff] %vm519_vm0, %v508_v62  ;;  %528 = vst.msk [vmem:[%s1225_s4 + $0x40] sm:$0xff] %vm519_vm0, %v510_v63  ;;  %v411_v3 = vadd.f32 %v382_v0, %v1208_v10  ;;  %v412_v4 = vadd.f32 %v384_v1, %v1205_v9 }
 0x188   : > { %v512_v5 = vmul.f32 %v945_v2, %v411_v3  ;;  %v514_v7 = vmul.f32 %v947_v6, %v412_v4 }
 0x189   : > { %v386_v8 = vpop.permute.xlu1 %385  ;;  %v388_v11 = vpop.permute.xlu0 %387 }
 0x18a   : > { %529 = vst.msk [vmem:[%s1225_s4 + $0x48] sm:$0xff] %vm519_vm0, %v512_v5  ;;  %530 = vst.msk [vmem:[%s1225_s4 + $0x50] sm:$0xff] %vm519_vm0, %v514_v7  ;;  %v413_v15 = vadd.f32 %v386_v8, %v1218_v14  ;;  %v414_v16 = vadd.f32 %v388_v11, %v1215_v13  ;;  %539 = sbr.rel (!%p1088_p4) target bundleno = 452 (0x1c4), region = 32 }
 0x18c   : > { %v516_v18 = vmul.f32 %v949_v12, %v413_v15  ;;  %v518_v10 = vmul.f32 %v951_v17, %v414_v16 }
 0x18e   : > { %531 = vst.msk [vmem:[%s1225_s4 + $0x58] sm:$0xff] %vm519_vm0, %v516_v18  ;;  %532 = vst.msk [vmem:[%s1225_s4 + $0x60] sm:$0xff] %vm519_vm0, %v518_v10 }
 0x18f   : > { %s1365_s5 = smov (!%p542_p8, %s541_s5), 13 }
 0x190   : > { %s817_s11 = sshll.u32 %s1365_s5, 7 }
 0x191   : > { %p820_p9 = scmp.eq.s32.totalorder %s817_s11, 0 }
 0x192   : > { %952 = sdivrem.u32 (!%p820_p9), %s1365_s5, 13 }
 0x193   : > { %550 = sbr.rel (%p820_p9) target bundleno = 452 (0x1c4), region = 36 }
 0x19b   : > { %s1278_s14 = spop.drf %952 }
 0x19c   : > { %p821_p10 = scmp.le.s32.totalorder %s1278_s14, 0 }
 0x19d   : > { %s1358_s12 = smov (!%p821_p10), %s1272_s9  ;;  %s1359_s15 = smov (!%p821_p10), %s1225_s4 }
 0x19e   : > { %761 = sbr.rel (%p821_p10) target bundleno = 427 (0x1ab), region = 115  ;;  %s1287_s17 = smov (!%p821_p10), 0  }
 0x19f   : > { %s1289_s18 = smov (!%p821_p10), 0  }
 0x1a3 LB: >> { %v639_v9 = vld [vmem:[%s1018_s15] sm:$0xff]  ;;  %v641_v13 = vld [vmem:[%s1018_s15 + $0x8] sm:$0xff]  ;;  %v643_v14 = vld [vmem:[%s1018_s15 + $0x10] sm:$0xff]  ;;  %s665_s19 = sadd.s32 1, %s1022_s17  ;;  %s633_s18 = sadd.s32 1, %s1026_s18   ;;  %s1026_s18 = sphi %s1289_s18, %s633_s18   ;;  %s1022_s17 = sphi %s1287_s17, %s1360_s17   ;;  %s1018_s15 = sphi %s1359_s15, %s670_s15   ;;  %s1014_s12 = sphi %s1358_s12, %s671_s12  }
 0x1a4   : >> { %640 = vst [vmem:[%s1014_s12] sm:$0xff] %v639_v9  ;;  %642 = vst [vmem:[%s1014_s12 + $0x8] sm:$0xff] %v641_v13  ;;  %v645_v19 = vld [vmem:[%s1018_s15 + $0x18] sm:$0xff]  ;;  %v647_v20 = vld [vmem:[%s1018_s15 + $0x20] sm:$0xff]  ;;  %p666_p11 = scmp.ge.s32.totalorder %s665_s19, %s1278_s14  ;;  %p632_p12 = scmp.ge.s32.totalorder %s633_s18, %s1278_s14 }
 0x1a5   : >> { %644 = vst [vmem:[%s1014_s12 + $0x10] sm:$0xff] %v643_v14  ;;  %v649_v21 = vld [vmem:[%s1018_s15 + $0x28] sm:$0xff]  ;;  %646 = vst [vmem:[%s1014_s12 + $0x18] sm:$0xff] %v645_v19  ;;  %v651_v22 = vld [vmem:[%s1018_s15 + $0x30] sm:$0xff] }
 0x1a6   : >> { %648 = vst [vmem:[%s1014_s12 + $0x20] sm:$0xff] %v647_v20  ;;  %650 = vst [vmem:[%s1014_s12 + $0x28] sm:$0xff] %v649_v21  ;;  %v653_v23 = vld [vmem:[%s1018_s15 + $0x38] sm:$0xff]  ;;  %v655_v24 = vld [vmem:[%s1018_s15 + $0x40] sm:$0xff]  ;;  %s1367_s19 = smov (%p666_p11, %s665_s19), 0  ;;  %635 = sbr.rel (!%p632_p12) target bundleno = 419 (0x1a3), region = 121 }
 0x1a7   : >> { %652 = vst [vmem:[%s1014_s12 + $0x30] sm:$0xff] %v651_v22  ;;  %654 = vst [vmem:[%s1014_s12 + $0x38] sm:$0xff] %v653_v23  ;;  %v657_v25 = vld [vmem:[%s1018_s15 + $0x48] sm:$0xff]  ;;  %v659_v26 = vld [vmem:[%s1018_s15 + $0x50] sm:$0xff]  ;;  %s668_s20 = smul.u32 104, %s1367_s19  ;;  %s1360_s17 = smov %s1367_s19 }
 0x1a8   : >> { %656 = vst [vmem:[%s1014_s12 + $0x40] sm:$0xff] %v655_v24  ;;  %v661_v27 = vld [vmem:[%s1018_s15 + $0x58] sm:$0xff]  ;;  %658 = vst [vmem:[%s1014_s12 + $0x48] sm:$0xff] %v657_v25  ;;  %v663_v28 = vld [vmem:[%s1018_s15 + $0x60] sm:$0xff] }
 0x1a9   : >> { %660 = vst [vmem:[%s1014_s12 + $0x50] sm:$0xff] %v659_v26  ;;  %662 = vst [vmem:[%s1014_s12 + $0x58] sm:$0xff] %v661_v27  ;;  %s670_s15 = scalar_lea.vmem %s1225_s4, %s668_s20 [#allocation2]  }
 0x1aa   : >> { %664 = vst [vmem:[%s1014_s12 + $0x60] sm:$0xff] %v663_v28  ;;  %s671_s12 = scalar_lea.vmem %s1272_s9, %s668_s20  }
 0x1ab PF: > { %954 = sdivrem.u32 %s1365_s5, 13 }
 0x1ac   : > { %s822_s21 = smul.u32 104, %s1278_s14 }
 0x1ae   : > { %s676_s22 = scalar_lea.vmem %s1225_s4, %s822_s21 [#allocation2]   ;;  %s678_s23 = scalar_lea.vmem %s1272_s9, %s822_s21  }
 0x1b4   : > { %s955_s24 = spop.drf %954 }
 0x1b5   : > { %p824_p13 = scmp.le.s32.totalorder %s955_s24, 0 }
 0x1b6   : > { %s1028_s25 = smov (!%p824_p13), %s678_s23   ;;  %s1032_s26 = smov (!%p824_p13), %s676_s22  }
 0x1b7   : > { %775 = sbr.rel (%p824_p13) target bundleno = 452 (0x1c4), region = 126  ;;  %s1036_s27 = smov (!%p824_p13), 0  }
 0x1b8   : > { %s1040_s28 = smov (!%p824_p13), 0  }
 0x1bc LB: >> { %v688_v29 = vld [vmem:[%s1034_s26] sm:$0xff]  ;;  %s690_s29 = sadd.s32 1, %s1038_s27  ;;  %s682_s28 = sadd.s32 1, %s1042_s28   ;;  %s1042_s28 = sphi %s1040_s28, %s682_s28   ;;  %s1038_s27 = sphi %s1036_s27, %s1037_s27   ;;  %s1034_s26 = sphi %s1032_s26, %s695_s26   ;;  %s1030_s25 = sphi %s1028_s25, %s696_s25  }
 0x1bd   : >> { %689 = vst [vmem:[%s1030_s25] sm:$0xff] %v688_v29  ;;  %p691_p0 = scmp.ge.s32.totalorder %s690_s29, %s955_s24  ;;  %p681_p1 = scmp.ge.s32.totalorder %s682_s28, %s955_s24 }
 0x1bf   : >> { %s1369_s29 = smov (%p691_p0, %s690_s29), 0  ;;  %684 = sbr.rel (!%p681_p1) target bundleno = 444 (0x1bc), region = 132 }
 0x1c0   : >> { %s825_s30 = sshll.u32 %s1369_s29, 3  ;;  %s1037_s27 = smov %s1369_s29  }
 0x1c1   : >> { %s695_s26 = scalar_lea.vmem %s676_s22, %s825_s30 [#allocation2]   ;;  %s696_s25 = scalar_lea.vmem %s678_s23, %s825_s30  }
 0x1c4 PF: > { %p9_p2 = scmp.ge.s32.totalorder %s1078_s13, 4   ;;  %s1361_s9 = smov %s1006_s10 }
 0x1c5   : > { %s1362_s10 = smov %s1086_s16  ;;  %s1363_s11 = smov %s1078_s13 }
 0x1c6   :  { %11 = sbr.rel (!%p9_p2) target bundleno = 2 (0x2), region = 143 }

</bundles_post_ra>
